<compile_context>
chip_gen: v5e
topology: v5e:2x2
jax: 0.10.0
libtpu: 0.0.40
codegen_flags: <defaults>
</compile_context>

<pallas_src>
import jax
import jax.numpy as jnp
from jax.experimental import pallas as pl
from jax.experimental.pallas import tpu as pltpu

BN_EPS = 1e-5


def _mish(x):
    # mish(x) = x * tanh(softplus(x)) = x * e*(e+2) / (e*(e+2) + 2), e = exp(x).
    # Clamp the exp argument: for x >= 20 the ratio is 1.0 in f32, so the
    # clamp is exact and avoids inf/NaN intermediates (no where needed).
    e = jnp.exp(jnp.minimum(x, 20.0))
    num = e * (e + 2.0)
    return x * (num / (num + 2.0))


def onion_kernel(x_ref, wc_ref, bc_ref, fc1w_ref, fc1b_ref,
                 fcow_ref, fcob_ref, out_ref):
    x = x_ref[...]                                   # (L, bt)  batch on lanes
    # Folded conv stack: (D, L) @ (L, bt) -> (D, bt), one MXU matmul.
    h0 = jnp.dot(wc_ref[...], x, preferred_element_type=jnp.float32) + bc_ref[...]
    a0 = _mish(h0)                                   # (D, bt), lane-dense EUP/VPU
    # fc_1: (NL, D) @ (D, bt) -> (NL, bt)
    h1 = jnp.dot(fc1w_ref[...], a0,
                 preferred_element_type=jnp.float32) + fc1b_ref[...]
    a1 = _mish(h1)
    # TODO(synk): nn.Dropout(0.2) is identity at inference; omitted (no RNG mask).
    # fc_out has a single unit: sublane reduce keeps the MXU free, lanes stay dense.
    o = jnp.sum(a1 * fcow_ref[...], axis=0, keepdims=True) + fcob_ref[...]
    out_ref[...] = jax.nn.sigmoid(o)                 # (1, bt) lane-dense store


def _compose_conv_stack(p, L, depth, ksize):
    """Fold initial_conv + depth x (Conv1d + BatchNorm-eval) into (Wc, bc).

    Returns Wc (D, L), bc (D, 1) with feature index f = c*Lf + l (PyTorch
    flatten order), such that pre-Mish activations = Wc @ x + bc.
    """
    C = p['w0'].shape[0]
    w0 = p['w0'].reshape(C).astype(jnp.float32)                    # (C,)
    b0 = p['b0'].astype(jnp.float32)                               # (C,)
    eye = jnp.eye(L, dtype=jnp.float32)
    # M[c, l, m]: coefficient of x[m] in feature (c, l); v[c, l]: bias term.
    M = w0[:, None, None] * eye[None, :, :]                        # (C, L, L)
    v = jnp.broadcast_to(b0[:, None], (C, L)).astype(jnp.float32)  # (C, L)

    scale = p['bn_gamma'] / jnp.sqrt(p['bn_var'] + BN_EPS)         # (depth, C)
    shift = p['bn_beta'] - p['bn_mean'] * scale

    Lcur = L
    for d in range(depth):
        Lout = Lcur - (ksize - 1)
        w_eff = (p['conv_w'][d] * scale[d][:, None, None]).astype(jnp.float32)
        b_eff = (p['conv_b'][d] * scale[d] + shift[d]).astype(jnp.float32)
        M_new = jnp.zeros((C, Lout, L), jnp.float32)
        v_new = jnp.zeros((C, Lout), jnp.float32)
        for k in range(ksize):
            M_new = M_new + jnp.einsum('oc,clm->olm', w_eff[:, :, k],
                                       M[:, k:k + Lout, :])
            v_new = v_new + jnp.einsum('oc,cl->ol', w_eff[:, :, k],
                                       v[:, k:k + Lout])
        M = M_new
        v = v_new + b_eff[:, None]
        Lcur = Lout

    Wc = M.reshape(C * Lcur, L)                                    # (D, L)
    bc = v.reshape(C * Lcur, 1)                                    # (D, 1)
    return Wc, bc


def onion_net_forward(x_ncl, p, *, depth=4, ksize=3, batch_tile=None):
    """x_ncl: (B, 1, L) float32 (PyTorch NCL). Returns (B, 1) sigmoid output."""
    B, _, L = x_ncl.shape
    C = p['w0'].shape[0]
    NL = p['fc1_w'].shape[0]
    Lf = L - depth * (ksize - 1)
    D = C * Lf

    # ---- precomputed param conversion (plain JAX, one-time) ----
    Wc, bc = _compose_conv_stack(p, L, depth, ksize)               # (D,L), (D,1)
    fc1w = p['fc1_w'].astype(jnp.float32)                          # (NL, D)
    fc1b = p['fc1_b'].reshape(NL, 1).astype(jnp.float32)
    fcow = p['fco_w'].reshape(NL, 1).astype(jnp.float32)
    fcob = p['fco_b'].reshape(1, 1).astype(jnp.float32)
    x_lb = jnp.transpose(x_ncl[:, 0, :], (1, 0)).astype(jnp.float32)  # (L, B)

    # ---- batch tile on the lane axis ----
    # Default: one big tile (covers whole batch up to 1024); for larger B use
    # 1024 (multiple of 128, so partial final tiles stay legal).  On v7x pass
    # batch_tile explicitly (e.g. B//2 rounded to 128) to keep grid >= 2.
    if batch_tile is not None:
        bt = batch_tile
    else:
        bt = B if B <= 1024 else 1024
    grid = (pl.cdiv(B, bt),)

    def wspec(arr):
        n = arr.ndim
        return pl.BlockSpec(arr.shape, lambda i, _n=n: (0,) * _n)

    in_specs = [
        pl.BlockSpec((L, bt), lambda i: (0, i)),      # x, tiled on lanes
        wspec(Wc), wspec(bc), wspec(fc1w), wspec(fc1b), wspec(fcow), wspec(fcob),
    ]
    out_specs = pl.BlockSpec((1, bt), lambda i: (0, i))

    # advisory cost estimate (parameter bytes counted once; advisory only)
    flops = 2 * B * (D * L + D * NL + NL)
    transcendentals = B * (D + NL + 1)
    nbytes = 4 * (x_lb.size + Wc.size + bc.size + fc1w.size + fc1b.size
                  + fcow.size + fcob.size + B)

    out_1b = pl.pallas_call(
        onion_kernel,
        out_shape=jax.ShapeDtypeStruct((1, B), jnp.float32),
        grid=grid,
        in_specs=in_specs,
        out_specs=out_specs,
        compiler_params=pltpu.CompilerParams(
            dimension_semantics=("parallel",)),
        cost_estimate=pl.CostEstimate(
            flops=int(flops), transcendentals=int(transcendentals),
            bytes_accessed=int(nbytes)),
    )(x_lb, Wc, bc, fc1w, fc1b, fcow, fcob)
    return jnp.transpose(out_1b, (1, 0))              # (B, 1)


# ---- pure-JAX reference (mirrors PyTorch NCL semantics) for verification ----
def _mish_ref(x):
    return x * jnp.tanh(jax.nn.softplus(x))


def ref_forward(x_ncl, p, *, depth=4, ksize=3):
    C = p['w0'].shape[0]
    h = x_ncl * p['w0'].reshape(1, C, 1) + p['b0'].reshape(1, C, 1)
    for d in range(depth):
        w = p['conv_w'][d]                       # (C_out, C_in, K)
        Lout = h.shape[2] - ksize + 1
        out = jnp.zeros((h.shape[0], C, Lout), jnp.float32)
        for k in range(ksize):
            out = out + jnp.einsum('bcl,dc->bdl', h[:, :, k:k + Lout], w[:, :, k])
        h = out + p['conv_b'][d][None, :, None]
        h = ((h - p['bn_mean'][d][None, :, None])
             / jnp.sqrt(p['bn_var'][d][None, :, None] + BN_EPS)
             * p['bn_gamma'][d][None, :, None] + p['bn_beta'][d][None, :, None])
    flat = h.reshape(h.shape[0], -1)
    a0 = _mish_ref(flat)
    h1 = _mish_ref(a0 @ p['fc1_w'].T + p['fc1_b'])
    o = h1 @ p['fco_w'].T + p['fco_b']
    return jax.nn.sigmoid(o)


if __name__ == "__main__":
    B, L, C, depth, K, NL = 2, 16, 8, 4, 3, 32
    Lf = L - depth * (K - 1)
    D = C * Lf

    keys = jax.random.split(jax.random.PRNGKey(0), 13)
    p = {
        'w0':       0.3 * jax.random.normal(keys[0], (C, 1, 1), jnp.float32),
        'b0':       0.1 * jax.random.normal(keys[1], (C,), jnp.float32),
        'conv_w':   0.2 * jax.random.normal(keys[2], (depth, C, C, K), jnp.float32),
        'conv_b':   0.1 * jax.random.normal(keys[3], (depth, C), jnp.float32),
        'bn_gamma': 1.0 + 0.1 * jax.random.normal(keys[4], (depth, C), jnp.float32),
        'bn_beta':  0.1 * jax.random.normal(keys[5], (depth, C), jnp.float32),
        'bn_mean':  0.1 * jax.random.normal(keys[6], (depth, C), jnp.float32),
        'bn_var':   0.5 + jax.random.uniform(keys[7], (depth, C), dtype=jnp.float32),
        'fc1_w':    0.1 * jax.random.normal(keys[8], (NL, D), jnp.float32),
        'fc1_b':    0.1 * jax.random.normal(keys[9], (NL,), jnp.float32),
        'fco_w':    0.2 * jax.random.normal(keys[10], (1, NL), jnp.float32),
        'fco_b':    0.1 * jax.random.normal(keys[11], (1,), jnp.float32),
    }
    x = jax.random.normal(keys[12], (B, 1, L), jnp.float32)

    y = jax.block_until_ready(onion_net_forward(x, p, depth=depth, ksize=K))
    y_ref = ref_forward(x, p, depth=depth, ksize=K)

    assert y.shape == (B, 1), y.shape
    if not jnp.allclose(y, y_ref, rtol=1e-4, atol=1e-4):
        raise AssertionError(f"mismatch: kernel={y}, ref={y_ref}")
    print("KERNEL_OK")
</pallas_src>

<mosaic_0001>
module attributes {stable_mosaic.version = 11 : i64} {
  func.func @onion_kernel(%arg0: i32, %arg1: memref<16x2xf32, #tpu.memory_space<vmem>>, %arg2: memref<64x16xf32, #tpu.memory_space<vmem>>, %arg3: memref<64x1xf32, #tpu.memory_space<vmem>>, %arg4: memref<32x64xf32, #tpu.memory_space<vmem>>, %arg5: memref<32x1xf32, #tpu.memory_space<vmem>>, %arg6: memref<32x1xf32, #tpu.memory_space<vmem>>, %arg7: memref<1x1xf32, #tpu.memory_space<vmem>>, %arg8: memref<1x2xf32, #tpu.memory_space<vmem>>) attributes {dimension_semantics = [#tpu.dimension_semantics<parallel>], iteration_bounds = array<i64: 1>, scalar_prefetch = 0 : i64, scratch_operands = 0 : i64, tpu.core_type = #tpu.core_type<tc>, window_params = [{transform_indices = @transform_0, window_bounds = array<i64: 16, 2>}, {pipeline_mode = #tpu.pipeline_mode<synchronous>, transform_indices = @transform_1, window_bounds = array<i64: 64, 16>}, {pipeline_mode = #tpu.pipeline_mode<synchronous>, transform_indices = @transform_2, window_bounds = array<i64: 64, 1>}, {pipeline_mode = #tpu.pipeline_mode<synchronous>, transform_indices = @transform_3, window_bounds = array<i64: 32, 64>}, {pipeline_mode = #tpu.pipeline_mode<synchronous>, transform_indices = @transform_4, window_bounds = array<i64: 32, 1>}, {pipeline_mode = #tpu.pipeline_mode<synchronous>, transform_indices = @transform_5, window_bounds = array<i64: 32, 1>}, {pipeline_mode = #tpu.pipeline_mode<synchronous>, transform_indices = @transform_6, window_bounds = array<i64: 1, 1>}, {transform_indices = @transform_7, window_bounds = array<i64: 1, 2>}]} {
    %c0 = arith.constant 0 : index
    %c0_0 = arith.constant 0 : index
    %0 = vector.load %arg1[%c0, %c0_0] : memref<16x2xf32, #tpu.memory_space<vmem>>, vector<16x2xf32>
    %c0_1 = arith.constant 0 : index
    %c0_2 = arith.constant 0 : index
    %1 = vector.load %arg2[%c0_1, %c0_2] : memref<64x16xf32, #tpu.memory_space<vmem>>, vector<64x16xf32>
    %cst = arith.constant dense<0.000000e+00> : vector<64x2xf32>
    %2 = tpu.matmul %1, %0, %cst {dimension_numbers = #tpu.dot_dimension_numbers<[1], [0], [0], [1], [0, 0, 1, 1], [], []>} : vector<64x16xf32>, vector<16x2xf32>, vector<64x2xf32> -> vector<64x2xf32>
    %c0_3 = arith.constant 0 : index
    %c0_4 = arith.constant 0 : index
    %3 = vector.load %arg3[%c0_3, %c0_4] : memref<64x1xf32, #tpu.memory_space<vmem>>, vector<64x1xf32>
    %4 = vector.broadcast %3 : vector<64x1xf32> to vector<64x2xf32>
    %5 = arith.addf %2, %4 : vector<64x2xf32>
    %cst_5 = arith.constant 2.000000e+01 : f32
    %6 = vector.broadcast %cst_5 : f32 to vector<64x2xf32>
    %7 = arith.minimumf %5, %6 : vector<64x2xf32>
    %8 = math.exp %7 : vector<64x2xf32>
    %cst_6 = arith.constant 2.000000e+00 : f32
    %9 = vector.broadcast %cst_6 : f32 to vector<64x2xf32>
    %10 = arith.addf %8, %9 : vector<64x2xf32>
    %11 = arith.mulf %8, %10 : vector<64x2xf32>
    %cst_7 = arith.constant 2.000000e+00 : f32
    %12 = vector.broadcast %cst_7 : f32 to vector<64x2xf32>
    %13 = arith.addf %11, %12 : vector<64x2xf32>
    %14 = arith.divf %11, %13 : vector<64x2xf32>
    %15 = arith.mulf %5, %14 : vector<64x2xf32>
    %c0_8 = arith.constant 0 : index
    %c0_9 = arith.constant 0 : index
    %16 = vector.load %arg4[%c0_8, %c0_9] : memref<32x64xf32, #tpu.memory_space<vmem>>, vector<32x64xf32>
    %cst_10 = arith.constant dense<0.000000e+00> : vector<32x2xf32>
    %17 = tpu.matmul %16, %15, %cst_10 {dimension_numbers = #tpu.dot_dimension_numbers<[1], [0], [0], [1], [0, 0, 1, 1], [], []>} : vector<32x64xf32>, vector<64x2xf32>, vector<32x2xf32> -> vector<32x2xf32>
    %c0_11 = arith.constant 0 : index
    %c0_12 = arith.constant 0 : index
    %18 = vector.load %arg5[%c0_11, %c0_12] : memref<32x1xf32, #tpu.memory_space<vmem>>, vector<32x1xf32>
    %19 = vector.broadcast %18 : vector<32x1xf32> to vector<32x2xf32>
    %20 = arith.addf %17, %19 : vector<32x2xf32>
    %cst_13 = arith.constant 2.000000e+01 : f32
    %21 = vector.broadcast %cst_13 : f32 to vector<32x2xf32>
    %22 = arith.minimumf %20, %21 : vector<32x2xf32>
    %23 = math.exp %22 : vector<32x2xf32>
    %cst_14 = arith.constant 2.000000e+00 : f32
    %24 = vector.broadcast %cst_14 : f32 to vector<32x2xf32>
    %25 = arith.addf %23, %24 : vector<32x2xf32>
    %26 = arith.mulf %23, %25 : vector<32x2xf32>
    %cst_15 = arith.constant 2.000000e+00 : f32
    %27 = vector.broadcast %cst_15 : f32 to vector<32x2xf32>
    %28 = arith.addf %26, %27 : vector<32x2xf32>
    %29 = arith.divf %26, %28 : vector<32x2xf32>
    %30 = arith.mulf %20, %29 : vector<32x2xf32>
    %c0_16 = arith.constant 0 : index
    %c0_17 = arith.constant 0 : index
    %31 = vector.load %arg6[%c0_16, %c0_17] : memref<32x1xf32, #tpu.memory_space<vmem>>, vector<32x1xf32>
    %32 = vector.broadcast %31 : vector<32x1xf32> to vector<32x2xf32>
    %33 = arith.mulf %30, %32 : vector<32x2xf32>
    %cst_18 = arith.constant dense<0.000000e+00> : vector<2xf32>
    %34 = vector.multi_reduction <add>, %33, %cst_18 [0] : vector<32x2xf32> to vector<2xf32>
    %35 = vector.shape_cast %34 : vector<2xf32> to vector<1x2xf32>
    %c0_19 = arith.constant 0 : index
    %c0_20 = arith.constant 0 : index
    %36 = vector.load %arg7[%c0_19, %c0_20] : memref<1x1xf32, #tpu.memory_space<vmem>>, vector<1x1xf32>
    %37 = vector.broadcast %36 : vector<1x1xf32> to vector<1x2xf32>
    %38 = arith.addf %35, %37 : vector<1x2xf32>
    %39 = arith.negf %38 : vector<1x2xf32>
    %40 = math.exp %39 : vector<1x2xf32>
    %cst_21 = arith.constant 1.000000e+00 : f32
    %41 = vector.broadcast %cst_21 : f32 to vector<1x2xf32>
    %42 = arith.addf %41, %40 : vector<1x2xf32>
    %43 = arith.divf %41, %42 : vector<1x2xf32>
    %c0_22 = arith.constant 0 : index
    %c0_23 = arith.constant 0 : index
    %44 = vector.load %arg8[%c0_22, %c0_23] : memref<1x2xf32, #tpu.memory_space<vmem>>, vector<1x2xf32>
    tpu.vector_store %arg8[%c0_22, %c0_23], %43 {strides = array<i32>} : memref<1x2xf32, #tpu.memory_space<vmem>>, vector<1x2xf32>,
    return
  }
  func.func @transform_0(%arg0: i32) -> (i32, i32) {
    %c0_i32 = arith.constant 0 : i32
    %c0_i32_0 = arith.constant 0 : i32
    return %c0_i32, %arg0 : i32, i32
  }
  func.func @transform_1(%arg0: i32) -> (i32, i32) {
    %c0_i32 = arith.constant 0 : i32
    %c0_i32_0 = arith.constant 0 : i32
    %c0_i32_1 = arith.constant 0 : i32
    return %c0_i32, %c0_i32_0 : i32, i32
  }
  func.func @transform_2(%arg0: i32) -> (i32, i32) {
    %c0_i32 = arith.constant 0 : i32
    %c0_i32_0 = arith.constant 0 : i32
    %c0_i32_1 = arith.constant 0 : i32
    return %c0_i32, %c0_i32_0 : i32, i32
  }
  func.func @transform_3(%arg0: i32) -> (i32, i32) {
    %c0_i32 = arith.constant 0 : i32
    %c0_i32_0 = arith.constant 0 : i32
    %c0_i32_1 = arith.constant 0 : i32
    return %c0_i32, %c0_i32_0 : i32, i32
  }
  func.func @transform_4(%arg0: i32) -> (i32, i32) {
    %c0_i32 = arith.constant 0 : i32
    %c0_i32_0 = arith.constant 0 : i32
    %c0_i32_1 = arith.constant 0 : i32
    return %c0_i32, %c0_i32_0 : i32, i32
  }
  func.func @transform_5(%arg0: i32) -> (i32, i32) {
    %c0_i32 = arith.constant 0 : i32
    %c0_i32_0 = arith.constant 0 : i32
    %c0_i32_1 = arith.constant 0 : i32
    return %c0_i32, %c0_i32_0 : i32, i32
  }
  func.func @transform_6(%arg0: i32) -> (i32, i32) {
    %c0_i32 = arith.constant 0 : i32
    %c0_i32_0 = arith.constant 0 : i32
    %c0_i32_1 = arith.constant 0 : i32
    return %c0_i32, %c0_i32_0 : i32, i32
  }
  func.func @transform_7(%arg0: i32) -> (i32, i32) {
    %c0_i32 = arith.constant 0 : i32
    %c0_i32_0 = arith.constant 0 : i32
    return %c0_i32, %arg0 : i32, i32
  }
}

</mosaic_0001>

<bundles_post_ra>
// kernel: tpu_custom_call.1
= control target key start
LH: loop header
LB: loop body
LE: loop exit
PB: predicated region body
PF: predicated region fallthrough
CT: control target
= control target key end

     0   :  { %s1109_s0 = inlined_call_operand.vmem [shape: f32[16,2], index: 0, kind: input, shape index: {}]   ;;  %s1110_s1 = inlined_call_operand.vmem [shape: f32[64,16], index: 1, kind: input, shape index: {}]   ;;  %s1111_s2 = inlined_call_operand.vmem [shape: f32[64,1], index: 2, kind: input, shape index: {}]   ;;  %s1112_s3 = inlined_call_operand.vmem [shape: f32[32,64], index: 3, kind: input, shape index: {}]   ;;  %s1113_s4 = inlined_call_operand.vmem [shape: f32[32,1], index: 4, kind: input, shape index: {}]   ;;  %s1114_s5 = inlined_call_operand.vmem [shape: f32[32,1], index: 5, kind: input, shape index: {}]   ;;  %s1115_s6 = inlined_call_operand.<no memory space> [shape: f32[1,1], index: 6, kind: input, shape index: {}]   ;;  %s1116_s7 = inlined_call_operand.hbm [shape: f32[1,2], index: 7, kind: output, shape index: {}]  }
   0x1   :  { %v12_v0 = vstv %s1115_s6 }
   0x2   :  { %13 = vst [vmem:[#allocation2] sm:$0x1] %v12_v0 }
   0x3   :  { %v30_v1 = vld [vmem:[%s1109_s0 + $0x8] sm:$0xff]  ;;  %v46_v2 = vld [vmem:[%s1111_s2 + $0x38] sm:$0xff]  ;;  %v680_v4 = vmov 0   ;;  %v29_v5 = vld [vmem:[%s1109_s0] sm:$0xff]  ;;  %vm87_vm0 = vcmask 130048  }
   0x4   :  { %v44_v3 = vld [vmem:[%s1111_s2 + $0x28] sm:$0xff]  ;;  %600 = vset.pattern.permute.xlu1 %v680_v4  ;;  %599 = vset.pattern.permute.xlu0 %v680_v4  ;;  %v31_v6 = vld [vmem:[%s1110_s1] sm:$0xff]  ;;  %v42_v8 = vld [vmem:[%s1111_s2 + $0x18] sm:$0xff] }
   0x5   :  { %126 = vmatpush.msra.mxu0 %v30_v1  ;;  %587 = vmatpush.msra.mxu2 %v30_v1  ;;  %v35_v7 = vld [vmem:[%s1110_s1 + $0x20] sm:$0xff] }
   0x6   :  { %84 = vperm.xlu0 %599, %v46_v2   ;;  %74 = vperm.xlu1 %600, %v44_v3  }
   0x7   :  { %127 = vmatpush.msra.mxu0 %v29_v5  ;;  %588 = vmatpush.msra.mxu2 %v29_v5 }
   0x8   :  { %574 = vmatmul.msk.f32.vlgmr.msra.gmra.mxu0 %vm87_vm0, %v31_v6  ;;  %578 = vmatmul.msk.f32.vlgmr.msra.gmra.mxu2 %vm87_vm0, %v35_v7 }
   0x9   :  { %601 = vset.pattern.permute.xlu2 %v680_v4 }
   0xa   :  { %64 = vperm.xlu2 %601, %v42_v8  }
   0xb   :  { %14 = vsyncpa [#allocation4], 0  ;;  %v45_v9 = vld [vmem:[%s1111_s2 + $0x30] sm:$0xff]  ;;  %v43_v10 = vld [vmem:[%s1111_s2 + $0x20] sm:$0xff] }
   0xc   :  { %v32_v11 = vld [vmem:[%s1110_s1 + $0x8] sm:$0xff]  ;;  %v41_v13 = vld [vmem:[%s1111_s2 + $0x10] sm:$0xff]  ;;  %v39_v15 = vld [vmem:[%s1111_s2] sm:$0xff] }
   0xd   :  { %v36_v12 = vld [vmem:[%s1110_s1 + $0x28] sm:$0xff]  ;;  %v33_v16 = vld [vmem:[%s1110_s1 + $0x10] sm:$0xff]  ;;  %v333_v18 = vld [vmem:[%s1113_s4] sm:$0xff] }
   0xe   :  { %79 = vperm.xlu0 %599, %v45_v9   ;;  %69 = vperm.xlu1 %600, %v43_v10   ;;  %v40_v14 = vld [vmem:[%s1111_s2 + $0x8] sm:$0xff]  ;;  %v37_v17 = vld [vmem:[%s1110_s1 + $0x30] sm:$0xff]  ;;  %v34_v21 = vld [vmem:[%s1110_s1 + $0x18] sm:$0xff]  ;;  %s565_s2 = sshll.u32 %s1116_s7, 4  ;;  %s566_s2 = int_to_ptr.hbm [resolvable:$true] %s565_s2 }
   0xf   :  { %v334_v19 = vld [vmem:[%s1113_s4 + $0x8] sm:$0xff]  ;;  %v335_v20 = vld [vmem:[%s1113_s4 + $0x10] sm:$0xff]  ;;  %v38_v22 = vld [vmem:[%s1110_s1 + $0x38] sm:$0xff] }
  0x10   :  { %575 = vmatmul.msk.f32.gmra.mxu0 %vm87_vm0, %v32_v11  ;;  %579 = vmatmul.msk.f32.gmra.mxu2 %vm87_vm0, %v36_v12  ;;  %v336_v23 = vld [vmem:[%s1113_s4 + $0x18] sm:$0xff]  ;;  %v487_v24 = vld [vmem:[%s1114_s5] sm:$0xff]  ;;  %v488_v25 = vld [vmem:[%s1114_s5 + $0x8] sm:$0xff] }
  0x11   :  { %v489_v26 = vld [vmem:[%s1114_s5 + $0x10] sm:$0xff]  ;;  %v490_v27 = vld [vmem:[%s1114_s5 + $0x18] sm:$0xff]  ;;  %v529_v28 = vld [vmem:[#allocation2] sm:$0x1] }
  0x12   :  { %59 = vperm.xlu2 %601, %v41_v13  }
  0x16   :  { %54 = vperm.xlu0 %599, %v40_v14   ;;  %49 = vperm.xlu1 %600, %v39_v15  }
  0x18   :  { %576 = vmatmul.msk.f32.gmra.mxu0 %vm87_vm0, %v33_v16  ;;  %580 = vmatmul.msk.f32.gmra.mxu2 %vm87_vm0, %v37_v17 }
  0x1a   :  { %339 = vperm.xlu2 %601, %v333_v18  }
  0x1e   :  { %344 = vperm.xlu0 %599, %v334_v19   ;;  %349 = vperm.xlu1 %600, %v335_v20  }
  0x20   :  { %577 = vmatmul.msk.f32.gmra.mxu0 %vm87_vm0, %v34_v21  ;;  %581 = vmatmul.msk.f32.gmra.mxu2 %vm87_vm0, %v38_v22 }
  0x22   :  { %354 = vperm.xlu2 %601, %v336_v23  }
  0x26   :  { %493 = vperm.xlu0 %599, %v487_v24   ;;  %498 = vperm.xlu1 %600, %v488_v25  }
  0x2a   :  { %503 = vperm.xlu2 %601, %v489_v26  }
  0x2e   :  { %508 = vperm.xlu0 %599, %v490_v27   ;;  %532 = vperm.xlu1 %600, %v529_v28  }
  0x64   :  { %v65_v36 = vpop.permute.xlu2 %64 }
  0x6c   :  { %v60_v49 = vpop.permute.xlu2 %59 }
  0x78   :  { %v75_v29 = vpop.permute.xlu1 %74  ;;  %v85_v30 = vpop.permute.xlu0 %84 }
  0x80   :  { %v70_v31 = vpop.permute.xlu1 %69  ;;  %v80_v32 = vpop.permute.xlu0 %79 }
  0x85   :  { %v129_v33 = vpop.f32.mrf.mxu0 }
  0x88   :  { %v50_v34 = vpop.permute.xlu1 %49  ;;  %v55_v40 = vpop.permute.xlu0 %54 }
  0x89   :  { %v811_v35 = vadd.f32 %v129_v33, %v50_v34 }
  0x8b   :  { %v141_v37 = vpop.f32.mrf.mxu2  ;;  %v153_v41 = vmin.f32 %v811_v35, 20.0 }
  0x8c   :  { %v813_v38 = vadd.f32 %v141_v37, %v70_v31 }
  0x8d   :  { %v132_v39 = vpop.f32.mrf.mxu0  ;;  %v161_v45 = vmul.f32 1.442695, %v153_v41 }
  0x8e   :  { %v157_v42 = vmin.f32 %v813_v38, 20.0  ;;  %v817_v43 = vadd.f32 %v132_v39, %v55_v40 }
  0x90   :  { %v169_v44 = vmul.f32 1.442695, %v157_v42  ;;  %v154_v46 = vmin.f32 %v817_v43, 20.0 }
  0x92   :  { %602 = vpow2.f32 %v169_v44  ;;  %v163_v53 = vmul.f32 1.442695, %v154_v46 }
  0x93   :  { %v144_v47 = vpop.f32.mrf.mxu2  ;;  %604 = vpow2.f32 %v161_v45 }
  0x94   :  { %v820_v48 = vadd.f32 %v144_v47, %v75_v29 }
  0x95   :  { %v135_v50 = vpop.f32.mrf.mxu0 }
  0x96   :  { %v158_v51 = vmin.f32 %v820_v48, 20.0  ;;  %v823_v52 = vadd.f32 %v135_v50, %v60_v49 }
  0x98   :  { %v171_v54 = vmul.f32 1.442695, %v158_v51  ;;  %v155_v55 = vmin.f32 %v823_v52, 20.0  ;;  %v603_v56 = vpop.eup %602 }
  0x99   :  { %v605_v59 = vpop.eup %604  ;;  %v181_v61 = vadd.f32 2.0, %v603_v56 }
  0x9a   :  { %606 = vpow2.f32 %v171_v54  ;;  %v165_v57 = vmul.f32 1.442695, %v155_v55  ;;  %v177_v1 = vadd.f32 2.0, %v605_v59 }
  0x9b   :  { %608 = vpow2.f32 %v163_v53  ;;  %v147_v58 = vpop.f32.mrf.mxu2  ;;  %v832_v5 = vmul.f32 %v603_v56, %v181_v61 }
  0x9c   :  { %610 = vpow2.f32 %v165_v57  ;;  %v826_v60 = vadd.f32 %v147_v58, %v80_v32  ;;  %v836_v12 = vmul.f32 %v605_v59, %v177_v1 }
  0x9d   :  { %v138_v62 = vpop.f32.mrf.mxu0  ;;  %v841_v14 = vadd.f32 2.0, %v832_v5 }
  0x9e   :  { %v159_v63 = vmin.f32 %v826_v60, 20.0  ;;  %v829_v0 = vadd.f32 %v138_v62, %v65_v36  ;;  %v848_v19 = vadd.f32 2.0, %v836_v12 }
  0x9f   :  { %v272_v47 = vand.u32 2147483648, %v841_v14  ;;  %v270_v58 = vand.u32 2147483647, %v841_v14  ;;  %vm266_vm2 = vweird.f32 %v841_v14 }
  0xa0   :  { %v607_v2 = vpop.eup %606  ;;  %v173_v3 = vmul.f32 1.442695, %v159_v63  ;;  %v156_v4 = vmin.f32 %v829_v0, 20.0  ;;  %vm206_vm0 = vweird.f32 %v848_v19 }
  0xa1   :  { %v609_v6 = vpop.eup %608  ;;  %v182_v7 = vadd.f32 2.0, %v607_v2  ;;  %v908_v61 = vor.u32 1.1754944e-38, %v272_v47  ;;  %vm945_vm10 = vcmp.eq.f32.partialorder %v270_v58, 8.507059e+37 }
  0xa2   :  { %v611_v8 = vpop.eup %610  ;;  %612 = vpow2.f32 %v173_v3  ;;  %v167_v9 = vmul.f32 1.442695, %v156_v4  ;;  %v178_v15 = vadd.f32 2.0, %v609_v6 }
  0xa3   :  { %v150_v10 = vpop.f32.mrf.mxu2  ;;  %v834_v11 = vmul.f32 %v607_v2, %v182_v7  ;;  %v179_v17 = vadd.f32 2.0, %v611_v8 }
  0xa4   :  { %614 = vpow2.f32 %v167_v9  ;;  %v838_v13 = vadd.f32 %v150_v10, %v85_v30  ;;  %v851_v22 = vmul.f32 %v609_v6, %v178_v15 }
  0xa5   :  { %v844_v16 = vadd.f32 2.0, %v834_v11  ;;  %616 = vrcp.f32 %v841_v14  ;;  %v854_v24 = vmul.f32 %v611_v8, %v179_v17 }
  0xa6   :  { %v160_v18 = vmin.f32 %v838_v13, 20.0  ;;  %v860_v28 = vadd.f32 2.0, %v851_v22 }
  0xa7   :  { %618 = vrcp.f32 %v844_v16  ;;  %v868_v31 = vadd.f32 2.0, %v854_v24  ;;  %v287_v57 = vand.u32 2147483648, %v844_v16  ;;  %v285_v3 = vand.u32 2147483647, %v844_v16 }
  0xa8   :  { %v613_v20 = vpop.eup %612  ;;  %v175_v21 = vmul.f32 1.442695, %v160_v18  ;;  %v225_v1 = vand.u32 2147483647, %v860_v28  ;;  %v227_v6 = vand.u32 2147483648, %v860_v28  ;;  %vm281_vm1 = vweird.f32 %v844_v16 }
  0xa9   :  { %v183_v23 = vadd.f32 2.0, %v613_v20  ;;  %v288_v9 = vor.u32 1.1754944e-38, %v287_v57  ;;  %vm236_vm4 = vweird.f32 %v868_v31  ;;  %vm935_vm6 = vcmp.eq.f32.partialorder %v285_v3, 8.507059e+37 }
  0xaa   :  { %v615_v25 = vpop.eup %614  ;;  %620 = vpow2.f32 %v175_v21  ;;  %v242_v21 = vand.u32 2147483648, %v868_v31  ;;  %vm221_vm7 = vweird.f32 %v860_v28 }
  0xab   :  { %v856_v26 = vmul.f32 %v613_v20, %v183_v23  ;;  %v180_v27 = vadd.f32 2.0, %v615_v25  ;;  %622 = vrcp.f32 %v848_v19  ;;  %v870_v32 = vpop.eup %616  ;;  %v240_v20 = vand.u32 2147483647, %v868_v31 }
  0xac   :  { %v262_v42 = vmul.f32 %v870_v32, %v841_v14  ;;  %vm267_vm3 = vweird.f32 %v870_v32 }
  0xad   :  { %v863_v29 = vadd.f32 2.0, %v856_v26  ;;  %v865_v30 = vmul.f32 %v615_v25, %v180_v27  ;;  %v872_v33 = vpop.eup %618 }
  0xae   :  { %v277_v41 = vmul.f32 %v872_v33, %v844_v16  ;;  %v263_v54 = vsub.f32 1.0, %v262_v42  ;;  %vm282_vm8 = vweird.f32 %v872_v33 }
  0xaf   :  { %624 = vrcp.f32 %v863_v29  ;;  %v876_v36 = vadd.f32 2.0, %v865_v30  ;;  %v300_v18 = vand.u32 2147483647, %v863_v29  ;;  %vm296_vm9 = vweird.f32 %v863_v29  ;;  %vm971_vm15 = vmor %vm281_vm1, %vm282_vm8 }
  0xb0   :  { %v621_v34 = vpop.eup %620  ;;  %626 = vrcp.f32 %v860_v28  ;;  %v278_v53 = vsub.f32 1.0, %v277_v41  ;;  %v264_v8 = vmul.f32 %v870_v32, %v263_v54  ;;  %v302_v41 = vand.u32 2147483648, %v863_v29  ;;  %vm987_vm1 = vmor %vm266_vm2, %vm267_vm3 }
  0xb1   :  { %v879_v37 = vpop.eup %622  ;;  %v184_v39 = vadd.f32 2.0, %v621_v34  ;;  %628 = vrcp.f32 %v868_v31  ;;  %vm959_vm13 = vcmp.eq.f32.partialorder %v300_v18, 8.507059e+37  ;;  %v255_v18 = vand.u32 2147483647, %v876_v36 }
  0xb2   :  { %630 = vrcp.f32 %v876_v36  ;;  %v202_v44 = vmul.f32 %v879_v37, %v848_v19  ;;  %v279_v7 = vmul.f32 %v872_v33, %v278_v53  ;;  %v303_v3 = vor.u32 1.1754944e-38, %v302_v41 }
  0xb3   :  { %v883_v40 = vmul.f32 %v621_v34, %v184_v39 }
  0xb4   :  { %v203_v59 = vsub.f32 1.0, %v202_v44  ;;  %v280_v42 = vadd.f32 %v872_v33, %v279_v7  ;;  %v265_v44 = vadd.f32 %v870_v32, %v264_v8 }
  0xb5   :  { %v891_v45 = vpop.eup %624  ;;  %v894_v46 = vadd.f32 2.0, %v883_v40 }
  0xb6   :  { %v897_v49 = vpop.eup %626  ;;  %v292_v50 = vmul.f32 %v891_v45, %v863_v29  ;;  %v927_v15 = vmul.f32 %v879_v37, %v203_v59  ;;  %vm297_vm5 = vweird.f32 %v891_v45 }
  0xb7   :  { %v901_v51 = vpop.eup %628  ;;  %632 = vrcp.f32 %v894_v46  ;;  %v217_v63 = vmul.f32 %v897_v49, %v860_v28  ;;  %vm222_vm11 = vweird.f32 %v897_v49  ;;  %v315_v54 = vand.u32 2147483647, %v894_v46  ;;  %vm955_vm12 = vmor %vm296_vm9, %vm297_vm5 }
  0xb8   :  { %v904_v55 = vpop.eup %630  ;;  %v293_v56 = vsub.f32 1.0, %v292_v50  ;;  %v232_v4 = vmul.f32 %v901_v51, %v868_v31  ;;  %vm251_vm5 = vweird.f32 %v876_v36  ;;  %vm237_vm9 = vweird.f32 %v901_v51 }
  0xb9   :  { %v247_v62 = vmul.f32 %v904_v55, %v876_v36  ;;  %v218_v23 = vsub.f32 1.0, %v217_v63  ;;  %vm252_vm8 = vweird.f32 %v904_v55  ;;  %vm316_vm2 = vcmp.eq.f32.partialorder %v315_v54, 8.507059e+37  ;;  %vm1005_vm3 = vmor %vm236_vm4, %vm237_vm9 }
  0xba   :  { %v294_v2 = vmul.f32 %v891_v45, %v293_v56  ;;  %v233_v39 = vsub.f32 1.0, %v232_v4  ;;  %v317_v56 = vand.u32 2147483648, %v894_v46  ;;  %v284_v4 = vsel %vm971_vm15, %v872_v33, %v280_v42  ;;  %vm1035_vm4 = vmor %vm221_vm7, %vm222_vm11 }
  0xbb   :  { %v248_v10 = vsub.f32 1.0, %v247_v62  ;;  %v219_v58 = vmul.f32 %v897_v49, %v218_v23  ;;  %v243_v42 = vor.u32 1.1754944e-38, %v242_v21  ;;  %v210_v50 = vand.u32 2147483647, %v848_v19 }
  0xbc   :  { %v295_v27 = vadd.f32 %v891_v45, %v294_v2  ;;  %v234_v2 = vmul.f32 %v901_v51, %v233_v39  ;;  %v318_v33 = vor.u32 1.1754944e-38, %v317_v56  ;;  %vm226_vm7 = vcmp.eq.f32.partialorder %v225_v1, 8.507059e+37 }
  0xbd   :  { %v633_v17 = vpop.eup %632  ;;  %v249_v53 = vmul.f32 %v904_v55, %v248_v10  ;;  %v257_v10 = vand.u32 2147483648, %v876_v36  ;;  %v220_v36 = vadd.f32 %v897_v49, %v219_v58  ;;  %vm211_vm11 = vcmp.eq.f32.partialorder %v210_v50, 8.507059e+37 }
  0xbe   :  { %v307_v25 = vmul.f32 %v633_v17, %v894_v46  ;;  %vm312_vm14 = vweird.f32 %v633_v17  ;;  %v299_v62 = vsel %vm955_vm12, %v891_v45, %v295_v27  ;;  %vm311_vm12 = vweird.f32 %v894_v46 }
  0xbf   :  { %v250_v7 = vadd.f32 %v904_v55, %v249_v53  ;;  %vm313_vm15 = vmor %vm311_vm12, %vm312_vm14  ;;  %v304_v8 = vsel %vm959_vm13, %v303_v3, %v299_v62  ;;  %v269_v46 = vsel %vm987_vm1, %v870_v32, %v265_v44  ;;  %v235_v23 = vadd.f32 %v901_v51, %v234_v2 }
  0xc0   :  { %v308_v47 = vsub.f32 1.0, %v307_v25  ;;  %v289_v32 = vsel %vm935_vm6, %v288_v9, %v284_v4  ;;  %vm1013_vm13 = vmor %vm251_vm5, %vm252_vm8  ;;  %vm1017_vm14 = vcmp.eq.f32.partialorder %v240_v20, 8.507059e+37  ;;  %vm207_vm12 = vweird.f32 %v879_v37 }
  0xc1   :  { %v305_v41 = vmul.f32 %v304_v8, %v856_v26  ;;  %v254_v9 = vsel %vm1013_vm13, %v904_v55, %v250_v7  ;;  %v274_v34 = vsel %vm945_vm10, %v908_v61, %v269_v46  ;;  %v258_v20 = vor.u32 1.1754944e-38, %v257_v10  ;;  %vm208_vm10 = vmor %vm206_vm0, %vm207_vm12 }
  0xc2   :  { %v309_v59 = vmul.f32 %v633_v17, %v308_v47  ;;  %v205_v26 = vadd.f32 %v879_v37, %v927_v15  ;;  %v290_v44 = vmul.f32 %v289_v32, %v834_v11  ;;  %vm256_vm6 = vcmp.eq.f32.partialorder %v255_v18, 8.507059e+37 }
  0xc3   :  { %v239_v61 = vsel %vm1005_vm3, %v901_v51, %v235_v23  ;;  %v259_v21 = vsel %vm256_vm6, %v258_v20, %v254_v9  ;;  %v228_v47 = vor.u32 1.1754944e-38, %v227_v6  ;;  %v212_v53 = vand.u32 2147483648, %v848_v19 }
  0xc4   :  { %v310_v45 = vadd.f32 %v633_v17, %v309_v59  ;;  %v327_v15 = vmul.f32 %v305_v41, %v826_v60  ;;  %v224_v11 = vsel %vm1035_vm4, %v897_v49, %v220_v36  ;;  %v244_v51 = vsel %vm1017_vm14, %v243_v42, %v239_v61  ;;  %v345_v59 = vpop.permute.xlu0 %344 }
  0xc5   :  { %v326_v60 = vmul.f32 %v290_v44, %v820_v48  ;;  %v209_v6 = vsel %vm208_vm10, %v879_v37, %v205_v26  ;;  %v229_v49 = vsel %vm226_vm7, %v228_v47, %v224_v11  ;;  %v213_v54 = vor.u32 1.1754944e-38, %v212_v53 }
  0xc6   :  { %v314_v14 = vsel %vm313_vm15, %v633_v17, %v310_v45  ;;  %v245_v1 = vmul.f32 %v244_v51, %v854_v24  ;;  %v230_v48 = vmul.f32 %v229_v49, %v851_v22  ;;  %vm357_vm0 = vcmask 523264   ;;  %v330_v22 = vld [vmem:[%s1112_s3 + $0x8] sm:$0xff]  ;;  %v350_v45 = vpop.permute.xlu1 %349 }
  0xc7   :  { %v319_v27 = vsel %vm316_vm2, %v318_v33, %v314_v14  ;;  %v214_v56 = vsel %vm211_vm11, %v213_v54, %v209_v6 }
  0xc8   :  { %v320_v31 = vmul.f32 %v319_v27, %v883_v40  ;;  %v215_v37 = vmul.f32 %v214_v56, %v836_v12 }
  0xca   :  { %v328_v55 = vmul.f32 %v320_v31, %v838_v13  ;;  %v275_v13 = vmul.f32 %v274_v34, %v832_v5  ;;  %v260_v5 = vmul.f32 %v259_v21, %v865_v30  ;;  %v323_v30 = vmul.f32 %v245_v1, %v823_v52  ;;  %v340_v52 = vpop.permute.xlu2 %339 }
  0xcb   :  { %v321_v24 = vmul.f32 %v215_v37, %v811_v35  ;;  %v332_v35 = vld [vmem:[%s1112_s3 + $0x18] sm:$0xff] }
  0xcc   :  { %378 = vmatpush.msra.mxu1 %v328_v55  ;;  %589 = vmatpush.msra.mxu3 %v328_v55  ;;  %v325_v28 = vmul.f32 %v275_v13, %v813_v38  ;;  %v324_v19 = vmul.f32 %v260_v5, %v829_v0  ;;  %v322_v38 = vmul.f32 %v230_v48, %v817_v43  ;;  %v329_v0 = vld [vmem:[%s1112_s3] sm:$0xff]  ;;  %v331_v43 = vld [vmem:[%s1112_s3 + $0x10] sm:$0xff]  ;;  %s681_s3 = smov [#allocation3]  }
  0xcd   :  { %s563_s9 = sshll.u32 %s681_s3, 4  ;;  %s564_s9 = int_to_ptr.vmem [resolvable:$true] %s563_s9 }
  0xce   :  { %379 = vmatpush.msra.mxu1 %v327_v15  ;;  %590 = vmatpush.msra.mxu3 %v327_v15 }
  0xd0   :  { %380 = vmatpush.msra.mxu1 %v326_v60  ;;  %591 = vmatpush.msra.mxu3 %v326_v60 }
  0xd2   :  { %381 = vmatpush.msra.mxu1 %v325_v28  ;;  %592 = vmatpush.msra.mxu3 %v325_v28  ;;  %v355_v25 = vpop.permute.xlu2 %354 }
  0xd4   :  { %382 = vmatpush.msra.mxu1 %v324_v19  ;;  %593 = vmatpush.msra.mxu3 %v324_v19 }
  0xd6   :  { %383 = vmatpush.msra.mxu1 %v323_v30  ;;  %594 = vmatpush.msra.mxu3 %v323_v30 }
  0xd8   :  { %384 = vmatpush.msra.mxu1 %v322_v38  ;;  %595 = vmatpush.msra.mxu3 %v322_v38 }
  0xda   :  { %385 = vmatpush.msra.mxu1 %v321_v24  ;;  %596 = vmatpush.msra.mxu3 %v321_v24 }
  0xdb   :  { %582 = vmatmul.msk.f32.vlgmr.msra.gmra.mxu1 %vm357_vm0, %v329_v0  ;;  %583 = vmatmul.msk.f32.vlgmr.msra.gmra.mxu3 %vm357_vm0, %v330_v22 }
  0xe3   :  { %584 = vmatmul.msk.f32.gmra.mxu3 %vm357_vm0, %v331_v43 }
  0xeb   :  { %585 = vmatmul.msk.f32.gmra.mxu3 %vm357_vm0, %v332_v35 }
 0x158   :  { %v387_v12 = vpop.f32.mrf.mxu1 }
 0x159   :  { %v1086_v57 = vadd.f32 %v387_v12, %v340_v52 }
 0x15b   :  { %v399_v29 = vmin.f32 %v1086_v57, 20.0 }
 0x15d   :  { %v403_v58 = vmul.f32 1.442695, %v399_v29 }
 0x15e   :  { %v390_v62 = vpop.f32.mrf.mxu3 }
 0x15f   :  { %634 = vpow2.f32 %v403_v58  ;;  %v1089_v63 = vadd.f32 %v390_v62, %v345_v59 }
 0x161   :  { %v400_v2 = vmin.f32 %v1089_v63, 20.0 }
 0x163   :  { %v405_v3 = vmul.f32 1.442695, %v400_v2 }
 0x165   :  { %v635_v4 = vpop.eup %634  ;;  %636 = vpow2.f32 %v405_v3 }
 0x166   :  { %v411_v16 = vadd.f32 2.0, %v635_v4  ;;  %v393_v7 = vpop.f32.mrf.mxu3 }
 0x167   :  { %v1092_v33 = vadd.f32 %v393_v7, %v350_v45  ;;  %v494_v45 = vpop.permute.xlu0 %493 }
 0x168   :  { %v1094_v8 = vmul.f32 %v635_v4, %v411_v16 }
 0x169   :  { %v401_v46 = vmin.f32 %v1092_v33, 20.0 }
 0x16a   :  { %v419_v10 = vadd.f32 2.0, %v1094_v8 }
 0x16b   :  { %v637_v14 = vpop.eup %636  ;;  %v407_v18 = vmul.f32 1.442695, %v401_v46 }
 0x16c   :  { %638 = vrcp.f32 %v419_v10  ;;  %v412_v23 = vadd.f32 2.0, %v637_v14  ;;  %v432_v53 = vand.u32 2147483647, %v419_v10  ;;  %v434_v5 = vand.u32 2147483648, %v419_v10 }
 0x16d   :  { %640 = vpow2.f32 %v407_v18  ;;  %vm428_vm8 = vweird.f32 %v419_v10  ;;  %v499_v18 = vpop.permute.xlu1 %498 }
 0x16e   :  { %v396_v27 = vpop.f32.mrf.mxu3  ;;  %v416_v32 = vmul.f32 %v637_v14, %v412_v23  ;;  %vm433_vm3 = vcmp.eq.f32.partialorder %v432_v53, 8.507059e+37  ;;  %v435_v30 = vor.u32 1.1754944e-38, %v434_v5 }
 0x16f   :  { %v1098_v17 = vadd.f32 %v396_v27, %v355_v25  ;;  %v504_v25 = vpop.permute.xlu2 %503 }
 0x170   :  { %v420_v39 = vadd.f32 2.0, %v416_v32 }
 0x171   :  { %v402_v31 = vmin.f32 %v1098_v17, 20.0 }
 0x172   :  { %v639_v41 = vpop.eup %638  ;;  %642 = vrcp.f32 %v420_v39  ;;  %v449_v11 = vand.u32 2147483648, %v420_v39  ;;  %vm443_vm1 = vweird.f32 %v420_v39  ;;  %v447_v49 = vand.u32 2147483647, %v420_v39 }
 0x173   :  { %v641_v9 = vpop.eup %640  ;;  %v424_v36 = vmul.f32 %v639_v41, %v419_v10  ;;  %v409_v20 = vmul.f32 1.442695, %v402_v31  ;;  %vm429_vm9 = vweird.f32 %v639_v41 }
 0x174   :  { %v413_v34 = vadd.f32 2.0, %v641_v9  ;;  %vm430_vm2 = vmor %vm428_vm8, %vm429_vm9  ;;  %v450_v19 = vor.u32 1.1754944e-38, %v449_v11  ;;  %vm448_vm13 = vcmp.eq.f32.partialorder %v447_v49, 8.507059e+37 }
 0x175   :  { %644 = vpow2.f32 %v409_v20  ;;  %v425_v40 = vsub.f32 1.0, %v424_v36 }
 0x176   :  { %v417_v42 = vmul.f32 %v641_v9, %v413_v34  ;;  %v509_v34 = vpop.permute.xlu0 %508 }
 0x177   :  { %v426_v61 = vmul.f32 %v639_v41, %v425_v40 }
 0x178   :  { %v421_v26 = vadd.f32 2.0, %v417_v42  ;;  %v643_v55 = vpop.eup %642 }
 0x179   :  { %v439_v44 = vmul.f32 %v643_v55, %v420_v39  ;;  %vm444_vm5 = vweird.f32 %v643_v55  ;;  %v427_v13 = vadd.f32 %v639_v41, %v426_v61 }
 0x17a   :  { %646 = vrcp.f32 %v421_v26  ;;  %vm445_vm15 = vmor %vm443_vm1, %vm444_vm5  ;;  %v464_v37 = vand.u32 2147483648, %v421_v26  ;;  %v462_v0 = vand.u32 2147483647, %v421_v26  ;;  %vm458_vm12 = vweird.f32 %v421_v26 }
 0x17b   :  { %v645_v21 = vpop.eup %644  ;;  %v440_v47 = vsub.f32 1.0, %v439_v44  ;;  %v431_v56 = vsel %vm430_vm2, %v639_v41, %v427_v13  ;;  %vm515_vm5 = vcmask 15360  }
 0x17c   :  { %v414_v50 = vadd.f32 2.0, %v645_v21  ;;  %v436_v22 = vsel %vm433_vm3, %v435_v30, %v431_v56  ;;  %v465_v52 = vor.u32 1.1754944e-38, %v464_v37  ;;  %vm463_vm6 = vcmp.eq.f32.partialorder %v462_v0, 8.507059e+37 }
 0x17d   :  { %v441_v15 = vmul.f32 %v643_v55, %v440_v47  ;;  %v437_v29 = vmul.f32 %v436_v22, %v1094_v8 }
 0x17e   :  { %v418_v51 = vmul.f32 %v645_v21, %v414_v50  ;;  %v533_v50 = vpop.permute.xlu1 %532 }
 0x17f   :  { %v442_v6 = vadd.f32 %v643_v55, %v441_v15  ;;  %v483_v16 = vmul.f32 %v437_v29, %v1086_v57  ;;  %v535_v15 = vperm.slane %v533_v50, 0 }
 0x180   :  { %v647_v60 = vpop.eup %646  ;;  %v422_v28 = vadd.f32 2.0, %v418_v51 }
 0x181   :  { %v454_v54 = vmul.f32 %v647_v60, %v421_v26  ;;  %v446_v1 = vsel %vm445_vm15, %v643_v55, %v442_v6  ;;  %vm459_vm14 = vweird.f32 %v647_v60  ;;  %vm556_vm15 = vcmask 8192  }
 0x182   :  { %648 = vrcp.f32 %v422_v28  ;;  %v451_v38 = vsel %vm448_vm13, %v450_v19, %v446_v1  ;;  %vm460_vm4 = vmor %vm458_vm12, %vm459_vm14  ;;  %v479_v7 = vand.u32 2147483648, %v422_v28  ;;  %v477_v14 = vand.u32 2147483647, %v422_v28 }
 0x183   :  { %v455_v48 = vsub.f32 1.0, %v454_v54  ;;  %v452_v35 = vmul.f32 %v451_v38, %v416_v32  ;;  %vm473_vm10 = vweird.f32 %v422_v28  ;;  %v511_v32 = vmul.f32 %v494_v45, %v483_v16 }
 0x184   :  { %v480_v27 = vor.u32 1.1754944e-38, %v479_v7  ;;  %vm478_vm0 = vcmp.eq.f32.partialorder %v477_v14, 8.507059e+37 }
 0x185   :  { %v456_v24 = vmul.f32 %v647_v60, %v455_v48  ;;  %v484_v3 = vmul.f32 %v452_v35, %v1089_v63  ;;  %v516_v9 = vsel %vm515_vm5, %v511_v32, 0.0 }
 0x187   :  { %v457_v43 = vadd.f32 %v647_v60, %v456_v24  ;;  %v512_v23 = vmul.f32 %v499_v18, %v484_v3 }
 0x188   :  { %v649_v12 = vpop.eup %648 }
 0x189   :  { %v461_v58 = vsel %vm460_vm4, %v647_v60, %v457_v43  ;;  %v469_v62 = vmul.f32 %v649_v12, %v422_v28  ;;  %vm474_vm7 = vweird.f32 %v649_v12  ;;  %v517_v57 = vsel %vm515_vm5, %v512_v23, 0.0 }
 0x18a   :  { %v466_v59 = vsel %vm463_vm6, %v465_v52, %v461_v58  ;;  %vm475_vm11 = vmor %vm473_vm10, %vm474_vm7  ;;  %v518_v20 = vadd.f32 %v517_v57, %v516_v9 }
 0x18b   :  { %v467_v2 = vmul.f32 %v466_v59, %v417_v42  ;;  %v470_v4 = vsub.f32 1.0, %v469_v62 }
 0x18d   :  { %v485_v46 = vmul.f32 %v467_v2, %v1092_v33  ;;  %v471_v10 = vmul.f32 %v649_v12, %v470_v4 }
 0x18f   :  { %v472_v8 = vadd.f32 %v649_v12, %v471_v10  ;;  %v513_v39 = vmul.f32 %v504_v25, %v485_v46 }
 0x191   :  { %v476_v63 = vsel %vm475_vm11, %v649_v12, %v472_v8  ;;  %v519_v33 = vsel %vm515_vm5, %v513_v39, 0.0 }
 0x192   :  { %v481_v31 = vsel %vm478_vm0, %v480_v27, %v476_v63  ;;  %v520_v40 = vadd.f32 %v519_v33, %v518_v20 }
 0x193   :  { %v482_v41 = vmul.f32 %v481_v31, %v418_v51 }
 0x195   :  { %v486_v36 = vmul.f32 %v482_v41, %v1098_v17 }
 0x197   :  { %v514_v42 = vmul.f32 %v509_v34, %v486_v36 }
 0x199   :  { %v521_v26 = vsel %vm515_vm5, %v514_v42, 0.0 }
 0x19a   :  { %v522_v55 = vadd.f32 %v521_v26, %v520_v40 }
 0x19c   :  { %v523_v44 = vrot.slane %v522_v55, 4 }
 0x19e   :  { %v524_v61 = vadd.f32 %v523_v44, %v522_v55 }
 0x1a0   :  { %v525_v21 = vrot.slane %v524_v61, 2 }
 0x1a2   :  { %v526_v47 = vadd.f32 %v525_v21, %v524_v61 }
 0x1a4   :  { %v527_v53 = vrot.slane %v526_v47, 1 }
 0x1a6   :  { %v528_v13 = vadd.f32 %v527_v53, %v526_v47 }
 0x1a8   :  { %v536_v11 = vadd.f32 %v535_v15, %v528_v13 }
 0x1aa   :  { %v586_v51 = vmul.f32 -1.442695, %v536_v11 }
 0x1ac   :  { %650 = vpow2.f32 %v586_v51 }
 0x1b2   :  { %v651_v60 = vpop.eup %650 }
 0x1b3   :  { %v540_v5 = vadd.f32 1.0, %v651_v60 }
 0x1b5   :  { %652 = vrcp.f32 %v540_v5  ;;  %v552_v54 = vand.u32 2147483648, %v540_v5  ;;  %v550_v1 = vand.u32 2147483647, %v540_v5  ;;  %vm546_vm1 = vweird.f32 %v540_v5 }
 0x1b7   :  { %v553_v19 = vor.u32 1.1754944e-38, %v552_v54  ;;  %vm551_vm2 = vcmp.eq.f32.partialorder %v550_v1, 8.507059e+37 }
 0x1bb   :  { %v653_v17 = vpop.eup %652 }
 0x1bc   :  { %v542_v6 = vmul.f32 %v653_v17, %v540_v5  ;;  %vm547_vm9 = vweird.f32 %v653_v17 }
 0x1bd   :  { %vm548_vm8 = vmor %vm546_vm1, %vm547_vm9 }
 0x1be   :  { %v543_v49 = vsub.f32 1.0, %v542_v6 }
 0x1c0   :  { %v544_v28 = vmul.f32 %v653_v17, %v543_v49 }
 0x1c2   :  { %v545_v56 = vadd.f32 %v653_v17, %v544_v28 }
 0x1c4   :  { %v549_v48 = vsel %vm548_vm8, %v653_v17, %v545_v56 }
 0x1c5   :  { %v554_v30 = vsel %vm551_vm2, %v553_v19, %v549_v48 }
 0x1c6   :  { %557 = vst.msk [vmem:[#allocation3] sm:$0x1] %vm556_vm15, %v554_v30 }
 0x1c7   :  { %568 = dma.vmem_to_hbm [thread:$0]  %s564_s9, 16, %s566_s2, [#allocation4]  }
 0x1c8   :  { %678 = dma.done.wait [#allocation4], 16  }
 0x1c9   :  { %679 = vsyncadd [#allocation4], 4294967280 }
 0x1ca   :  { %573 = vsyncpa [#allocation4], 1 }

</bundles_post_ra>
